<compile_context>
chip_gen: v7x
topology: tpu7x:2x2x1
jax: 0.10.0
libtpu: 0.0.40
codegen_flags: <defaults>
</compile_context>

<pallas_src>
import functools

import jax
import jax.numpy as jnp
import numpy as np
from jax.experimental import pallas as pl
from jax.experimental.pallas import tpu as pltpu


def _round_up(x, m):
    return (x + m - 1) // m * m


def _conv_block_kernel(x_ref, w1_ref, b1_ref, w2_ref, b2_ref, w3_ref, b3_ref,
                       o_ref, pad_ref, *, K, P, H, W, Cin, B_TILE):
    # x_ref  : (B_TILE, Cin, H*W)          flattened NCHW images for this batch tile
    # wX_ref : (Cout, K*K*C)   bf16        flattened weights, taps ordered (kh, kw, c)
    # bX_ref : (Cout, 1)       f32
    # o_ref  : (B_TILE, 3*Cout, H*W)       concatenated [o1; o2; o3]
    # pad_ref: (Cmax, L) f32 scratch, L = (H+2P)*W + 2P  (flat, zero-padded image)
    HW = H * W
    Cout = w1_ref.shape[0]
    Cin_k = w1_ref.shape[1] // (K * K)      # sublane-aligned layer-1 contraction size
    off = P * (W + 1)                       # lane offset of the image interior

    # Horizontal-padding validity masks, one per kw tap; shared by all layers / images.
    col = jax.lax.broadcasted_iota(jnp.int32, (1, HW), 1) % W
    masks = [(col >= (P - kw)) & (col < (W + P - kw)) for kw in range(K)]

    # Zero the padded flat image once per grid step; only the interiors are rewritten
    # below, so the zero borders provide the vertical padding for every layer & image.
    # (NOT gated on program_id==0: each TensorCore has its own scratch under "parallel"
    #  megacore semantics and only one of them executes step 0.)
    pad_ref[...] = jnp.zeros_like(pad_ref)

    def conv_relu(c_read, w_ref, b_ref):
        # Shift-and-mask im2col: every tap is a contiguous lane-slice (no reshape).
        pieces = []
        for kh in range(K):
            for kw in range(K):
                s = kh * W + kw
                patch = pad_ref[0:c_read, s:s + HW]            # (c_read, HW) f32
                if kw != P:                                    # center column: no mask
                    patch = jnp.where(masks[kw], patch, 0.0)
                pieces.append(patch)
        # bf16 MXU inputs (fewer MXU passes, half the vreg footprint); f32 accumulate.
        cols = jnp.concatenate(pieces, axis=0).astype(jnp.bfloat16)   # (K*K*c_read, HW)
        y = jnp.dot(w_ref[...], cols, preferred_element_type=jnp.float32)
        return jnp.maximum(y + b_ref[...], 0.0)                # (Cout, HW) f32

    for b in range(B_TILE):
        if b > 0 and Cin_k > Cin:
            # Layers 2/3 of the previous image dirtied rows [Cin, Cin_k); layer 1 needs
            # these zero-padded input channels to be zero again. Borders stay untouched.
            pad_ref[Cin:Cin_k, off:off + HW] = jnp.zeros((Cin_k - Cin, HW), jnp.float32)

        # layer 1 (rows Cin..Cin_k-1 of the scratch are zero -> padded channels)
        pad_ref[0:Cin, off:off + HW] = x_ref[b].astype(jnp.float32)
        y1 = conv_relu(Cin_k, w1_ref, b1_ref)

        # layer 2 (reuse the same padded scratch; borders are still zero)
        pad_ref[0:Cout, off:off + HW] = y1
        y2 = conv_relu(Cout, w2_ref, b2_ref)

        # layer 3
        pad_ref[0:Cout, off:off + HW] = y2
        y3 = conv_relu(Cout, w3_ref, b3_ref)

        # Single lane-dense store of the concatenated [o1; o2; o3] for this image.
        o_ref[b] = jnp.concatenate([y1, y2, y3], axis=0).astype(o_ref.dtype)


def _flatten_weight(w, cin_pad, cout_pad):
    # torch OIHW (Cout, Cin, KH, KW) -> (cout_pad, KH*KW*cin_pad) bf16,
    # taps ordered (kh, kw, c); padded rows/cols are zero.
    cout, cin, kh, kw = w.shape
    w = jnp.pad(w, ((0, cout_pad - cout), (0, cin_pad - cin), (0, 0), (0, 0)))
    w = jnp.transpose(w, (0, 2, 3, 1)).reshape(cout_pad, kh * kw * cin_pad)
    return w.astype(jnp.bfloat16)


def _pad_bias(b, cout_pad):
    return jnp.pad(b, (0, cout_pad - b.shape[0])).reshape(cout_pad, 1).astype(jnp.float32)


@functools.partial(jax.jit, static_argnames=("stride", "padding"))
def conv_block_forward(x_nchw, params, *, stride, padding):
    """ConvBlock forward. x_nchw: (N, Cin, H, W). Returns (N, 3*Cout, H, W)."""
    assert stride == 1, "Pallas kernel implemented for stride=1 (v[3] == 1)"
    # TODO(synk): strided (stride > 1) convolutions are not implemented in this kernel.
    N, Cin, H, W = x_nchw.shape
    (w1, b1), (w2, b2), (w3, b3) = params          # weights in torch OIHW layout
    Cout, _, KH, KW = w1.shape
    assert KH == KW, "square kernels only"
    K, P = KH, padding
    assert K == 2 * P + 1, "ConvBlock channel-concat requires 'same' convs (k == 2*pad+1)"

    HW = H * W
    L = (H + 2 * P) * W + 2 * P                    # flattened padded-image length
    Cin_k = _round_up(Cin, 8)                      # sublane-align layer-1 contraction dim
    Cout_k = _round_up(Cout, 8)                    # keep every im2col piece an 8-row tile
    Cmax = max(Cin_k, Cout_k)

    # Batch tile: amortize per-grid-step overhead & DMA latency. Keep >= 2 grid steps
    # (v7x: 2 TensorCores shard the parallel batch axis), bound the in-kernel unroll,
    # and keep the double-buffered in/out blocks well under the scoped VMEM limit.
    bytes_per_image = 4 * HW * (Cin + 3 * Cout_k) * 2        # in + out blocks, x2 buffers
    vmem_cap = max(1, (6 << 20) // bytes_per_image)
    B_TILE = int(max(1, min(N // 2 if N >= 2 else 1, 8, vmem_cap)))
    Np = _round_up(N, B_TILE)

    x_flat = x_nchw.reshape(N, Cin, HW)            # row-major: metadata-only reshape
    if Np != N:
        x_flat = jnp.pad(x_flat, ((0, Np - N), (0, 0), (0, 0)))

    w1f = _flatten_weight(w1, Cin_k, Cout_k)
    w2f = _flatten_weight(w2, Cout_k, Cout_k)
    w3f = _flatten_weight(w3, Cout_k, Cout_k)
    b1c, b2c, b3c = (_pad_bias(b, Cout_k) for b in (b1, b2, b3))

    kernel = functools.partial(_conv_block_kernel, K=K, P=P, H=H, W=W,
                               Cin=Cin, B_TILE=B_TILE)

    out = pl.pallas_call(
        kernel,
        out_shape=jax.ShapeDtypeStruct((Np, 3 * Cout_k, HW), x_nchw.dtype),
        grid_spec=pltpu.PrefetchScalarGridSpec(
            num_scalar_prefetch=0,
            grid=(Np // B_TILE,),
            in_specs=[
                pl.BlockSpec((B_TILE, Cin, HW), lambda n: (n, 0, 0)),
                pl.BlockSpec((Cout_k, K * K * Cin_k), lambda n: (0, 0)),
                pl.BlockSpec((Cout_k, 1), lambda n: (0, 0)),
                pl.BlockSpec((Cout_k, K * K * Cout_k), lambda n: (0, 0)),
                pl.BlockSpec((Cout_k, 1), lambda n: (0, 0)),
                pl.BlockSpec((Cout_k, K * K * Cout_k), lambda n: (0, 0)),
                pl.BlockSpec((Cout_k, 1), lambda n: (0, 0)),
            ],
            out_specs=pl.BlockSpec((B_TILE, 3 * Cout_k, HW), lambda n: (n, 0, 0)),
            scratch_shapes=[pltpu.VMEM((Cmax, L), jnp.float32)],
        ),
        compiler_params=pltpu.CompilerParams(
            dimension_semantics=("parallel",),
            vmem_limit_bytes=32 * 1024 * 1024,
        ),
    )(x_flat, w1f, b1c, w2f, b2c, w3f, b3c)

    out = out.reshape(Np, 3 * Cout_k, H, W)[:N]
    if Cout_k != Cout:                             # strip padded output channels
        out = jnp.concatenate(
            [out[:, i * Cout_k:i * Cout_k + Cout] for i in range(3)], axis=1)
    return out


def init_conv_params(key, cin, cout, k):
    """Deterministic init mimicking PyTorch Conv2d defaults (uniform +-1/sqrt(fan_in))."""
    fan_in = cin * k * k
    bound = 1.0 / np.sqrt(fan_in)
    kw_, kb_ = jax.random.split(key)
    w = jax.random.uniform(kw_, (cout, cin, k, k), jnp.float32, -bound, bound)  # OIHW
    b = jax.random.uniform(kb_, (cout,), jnp.float32, -bound, bound)
    return w, b


def _reference_conv_block(x_nchw, params, *, stride, padding):
    """Pure-JAX reference (lax conv) for correctness checking."""
    def conv(x, w, b):
        y = jax.lax.conv_general_dilated(
            x, w, window_strides=(stride, stride),
            padding=[(padding, padding), (padding, padding)],
            dimension_numbers=("NCHW", "OIHW", "NCHW"),
        )
        return jnp.maximum(y + b[None, :, None, None], 0.0)

    (w1, b1), (w2, b2), (w3, b3) = params
    o1 = conv(x_nchw, w1, b1)
    o2 = conv(o1, w2, b2)
    o3 = conv(o2, w3, b3)
    return jnp.concatenate([o1, o2, o3], axis=1)


if __name__ == "__main__":
    # v = [in_channels, out_channels, kernel_size, stride, padding]
    v = (4, 8, 3, 1, 1)
    H, W = 16, 16

    key = jax.random.PRNGKey(0)
    kx, k1, k2, k3 = jax.random.split(key, 4)
    params = (
        init_conv_params(k1, v[0], v[1], v[2]),
        init_conv_params(k2, v[1], v[1], v[2]),
        init_conv_params(k3, v[1], v[1], v[2]),
    )

    # bf16 MXU inputs (f32 accumulation) => tolerance loosened vs. the pure-f32 reference.
    # N=2 exercises the 1-image-per-step path; N=5 exercises B_TILE=2 + batch-pad remainder.
    for N in (2, 5):
        x = jax.random.normal(kx, (N, v[0], H, W), jnp.float32)   # NCHW like PyTorch
        out = jax.block_until_ready(
            conv_block_forward(x, params, stride=v[3], padding=v[4]))
        ref = jax.block_until_ready(
            _reference_conv_block(x, params, stride=v[3], padding=v[4]))
        assert out.shape == (N, 3 * v[1], H, W), out.shape
        np.testing.assert_allclose(np.asarray(out), np.asarray(ref), rtol=5e-2, atol=5e-2)

    print("KERNEL_OK")
</pallas_src>

<mosaic_0001>
module attributes {stable_mosaic.version = 11 : i64} {
  func.func @_conv_block_kernel(%arg0: i32, %arg1: memref<1x4x256xf32, #tpu.memory_space<vmem>>, %arg2: memref<8x72xbf16, #tpu.memory_space<vmem>>, %arg3: memref<8x1xf32, #tpu.memory_space<vmem>>, %arg4: memref<8x72xbf16, #tpu.memory_space<vmem>>, %arg5: memref<8x1xf32, #tpu.memory_space<vmem>>, %arg6: memref<8x72xbf16, #tpu.memory_space<vmem>>, %arg7: memref<8x1xf32, #tpu.memory_space<vmem>>, %arg8: memref<1x24x256xf32, #tpu.memory_space<vmem>>, %arg9: memref<8x290xf32, #tpu.memory_space<vmem>>) attributes {dimension_semantics = [#tpu.dimension_semantics<parallel>], iteration_bounds = array<i64: 2>, scalar_prefetch = 0 : i64, scratch_operands = 1 : i64, tpu.core_type = #tpu.core_type<tc>, window_params = [{transform_indices = @transform_0, window_bounds = array<i64: 1, 4, 256>}, {pipeline_mode = #tpu.pipeline_mode<synchronous>, transform_indices = @transform_1, window_bounds = array<i64: 8, 72>}, {pipeline_mode = #tpu.pipeline_mode<synchronous>, transform_indices = @transform_2, window_bounds = array<i64: 8, 1>}, {pipeline_mode = #tpu.pipeline_mode<synchronous>, transform_indices = @transform_3, window_bounds = array<i64: 8, 72>}, {pipeline_mode = #tpu.pipeline_mode<synchronous>, transform_indices = @transform_4, window_bounds = array<i64: 8, 1>}, {pipeline_mode = #tpu.pipeline_mode<synchronous>, transform_indices = @transform_5, window_bounds = array<i64: 8, 72>}, {pipeline_mode = #tpu.pipeline_mode<synchronous>, transform_indices = @transform_6, window_bounds = array<i64: 8, 1>}, {transform_indices = @transform_7, window_bounds = array<i64: 1, 24, 256>}]} {
    %0 = tpu.iota {dimensions = array<i32: 1>} : vector<1x256xi32>
    %c16_i32 = arith.constant 16 : i32
    %c0_i32 = arith.constant 0 : i32
    %1 = arith.cmpi eq, %c16_i32, %c0_i32 : i32
    %c1_i32 = arith.constant 1 : i32
    %2 = arith.select %1, %c1_i32, %c16_i32 : i32
    %3 = vector.broadcast %2 : i32 to vector<1x256xi32>
    %4 = arith.remsi %0, %3 : vector<1x256xi32>
    %c0_i32_0 = arith.constant 0 : i32
    %5 = vector.broadcast %c0_i32_0 : i32 to vector<1x256xi32>
    %6 = arith.cmpi ne, %4, %5 : vector<1x256xi32>
    %c0_i32_1 = arith.constant 0 : i32
    %7 = vector.broadcast %c0_i32_1 : i32 to vector<1x256xi32>
    %8 = arith.cmpi slt, %4, %7 : vector<1x256xi32>
    %c0_i32_2 = arith.constant 0 : i32
    %9 = arith.cmpi slt, %2, %c0_i32_2 : i32
    %10 = vector.broadcast %9 : i1 to vector<1x256xi1>
    %11 = vector.broadcast %10 : vector<1x256xi1> to vector<1x256xi1>
    %12 = arith.xori %8, %11 : vector<1x256xi1>
    %13 = arith.andi %12, %6 : vector<1x256xi1>
    %14 = vector.broadcast %2 : i32 to vector<1x256xi32>
    %15 = arith.addi %4, %14 : vector<1x256xi32>
    %16 = arith.select %13, %15, %4 : vector<1x256xi1>, vector<1x256xi32>
    %c1_i32_3 = arith.constant 1 : i32
    %17 = vector.broadcast %c1_i32_3 : i32 to vector<1x256xi32>
    %18 = arith.cmpi sge, %16, %17 : vector<1x256xi32>
    %c17_i32 = arith.constant 17 : i32
    %19 = vector.broadcast %c17_i32 : i32 to vector<1x256xi32>
    %20 = arith.cmpi slt, %16, %19 : vector<1x256xi32>
    %21 = arith.andi %18, %20 : vector<1x256xi1>
    %c-1_i32 = arith.constant -1 : i32
    %22 = vector.broadcast %c-1_i32 : i32 to vector<1x256xi32>
    %23 = arith.cmpi sge, %16, %22 : vector<1x256xi32>
    %c15_i32 = arith.constant 15 : i32
    %24 = vector.broadcast %c15_i32 : i32 to vector<1x256xi32>
    %25 = arith.cmpi slt, %16, %24 : vector<1x256xi32>
    %26 = arith.andi %23, %25 : vector<1x256xi1>
    %cst = arith.constant 0.000000e+00 : f32
    %27 = vector.broadcast %cst : f32 to vector<8x290xf32>
    %c0 = arith.constant 0 : index
    %c0_4 = arith.constant 0 : index
    %28 = vector.load %arg9[%c0, %c0_4] : memref<8x290xf32, #tpu.memory_space<vmem>>, vector<8x290xf32>
    tpu.vector_store %arg9[%c0, %c0_4], %27 {strides = array<i32>} : memref<8x290xf32, #tpu.memory_space<vmem>>, vector<8x290xf32>,
    %c0_5 = arith.constant 0 : index
    %c0_6 = arith.constant 0 : index
    %c0_7 = arith.constant 0 : index
    %29 = vector.load %arg1[%c0_5, %c0_6, %c0_7] : memref<1x4x256xf32, #tpu.memory_space<vmem>>, vector<1x4x256xf32>
    %30 = vector.shape_cast %29 : vector<1x4x256xf32> to vector<4x256xf32>
    %c0_8 = arith.constant 0 : index
    %c17 = arith.constant 17 : index
    %31 = vector.load %arg9[%c0_8, %c17] : memref<8x290xf32, #tpu.memory_space<vmem>>, vector<4x256xf32>
    tpu.vector_store %arg9[%c0_8, %c17], %30 {strides = array<i32>} : memref<8x290xf32, #tpu.memory_space<vmem>>, vector<4x256xf32>,
    %c0_9 = arith.constant 0 : index
    %c0_10 = arith.constant 0 : index
    %32 = vector.load %arg9[%c0_9, %c0_10] : memref<8x290xf32, #tpu.memory_space<vmem>>, vector<8x256xf32>
    %cst_11 = arith.constant 0.000000e+00 : f32
    %33 = vector.shape_cast %21 : vector<1x256xi1> to vector<1x256xi1>
    %34 = vector.broadcast %33 : vector<1x256xi1> to vector<8x256xi1>
    %35 = vector.broadcast %cst_11 : f32 to vector<8x256xf32>
    %36 = arith.select %34, %32, %35 : vector<8x256xi1>, vector<8x256xf32>
    %c0_12 = arith.constant 0 : index
    %c1 = arith.constant 1 : index
    %37 = vector.load %arg9[%c0_12, %c1] : memref<8x290xf32, #tpu.memory_space<vmem>>, vector<8x256xf32>
    %c0_13 = arith.constant 0 : index
    %c2 = arith.constant 2 : index
    %38 = vector.load %arg9[%c0_13, %c2] : memref<8x290xf32, #tpu.memory_space<vmem>>, vector<8x256xf32>
    %cst_14 = arith.constant 0.000000e+00 : f32
    %39 = vector.shape_cast %26 : vector<1x256xi1> to vector<1x256xi1>
    %40 = vector.broadcast %39 : vector<1x256xi1> to vector<8x256xi1>
    %41 = vector.broadcast %cst_14 : f32 to vector<8x256xf32>
    %42 = arith.select %40, %38, %41 : vector<8x256xi1>, vector<8x256xf32>
    %c0_15 = arith.constant 0 : index
    %c16 = arith.constant 16 : index
    %43 = vector.load %arg9[%c0_15, %c16] : memref<8x290xf32, #tpu.memory_space<vmem>>, vector<8x256xf32>
    %cst_16 = arith.constant 0.000000e+00 : f32
    %44 = vector.shape_cast %21 : vector<1x256xi1> to vector<1x256xi1>
    %45 = vector.broadcast %44 : vector<1x256xi1> to vector<8x256xi1>
    %46 = vector.broadcast %cst_16 : f32 to vector<8x256xf32>
    %47 = arith.select %45, %43, %46 : vector<8x256xi1>, vector<8x256xf32>
    %c0_17 = arith.constant 0 : index
    %c17_18 = arith.constant 17 : index
    %48 = vector.load %arg9[%c0_17, %c17_18] : memref<8x290xf32, #tpu.memory_space<vmem>>, vector<8x256xf32>
    %c0_19 = arith.constant 0 : index
    %c18 = arith.constant 18 : index
    %49 = vector.load %arg9[%c0_19, %c18] : memref<8x290xf32, #tpu.memory_space<vmem>>, vector<8x256xf32>
    %cst_20 = arith.constant 0.000000e+00 : f32
    %50 = vector.shape_cast %26 : vector<1x256xi1> to vector<1x256xi1>
    %51 = vector.broadcast %50 : vector<1x256xi1> to vector<8x256xi1>
    %52 = vector.broadcast %cst_20 : f32 to vector<8x256xf32>
    %53 = arith.select %51, %49, %52 : vector<8x256xi1>, vector<8x256xf32>
    %c0_21 = arith.constant 0 : index
    %c32 = arith.constant 32 : index
    %54 = vector.load %arg9[%c0_21, %c32] : memref<8x290xf32, #tpu.memory_space<vmem>>, vector<8x256xf32>
    %cst_22 = arith.constant 0.000000e+00 : f32
    %55 = vector.shape_cast %21 : vector<1x256xi1> to vector<1x256xi1>
    %56 = vector.broadcast %55 : vector<1x256xi1> to vector<8x256xi1>
    %57 = vector.broadcast %cst_22 : f32 to vector<8x256xf32>
    %58 = arith.select %56, %54, %57 : vector<8x256xi1>, vector<8x256xf32>
    %c0_23 = arith.constant 0 : index
    %c33 = arith.constant 33 : index
    %59 = vector.load %arg9[%c0_23, %c33] : memref<8x290xf32, #tpu.memory_space<vmem>>, vector<8x256xf32>
    %c0_24 = arith.constant 0 : index
    %c34 = arith.constant 34 : index
    %60 = vector.load %arg9[%c0_24, %c34] : memref<8x290xf32, #tpu.memory_space<vmem>>, vector<8x256xf32>
    %cst_25 = arith.constant 0.000000e+00 : f32
    %61 = vector.shape_cast %26 : vector<1x256xi1> to vector<1x256xi1>
    %62 = vector.broadcast %61 : vector<1x256xi1> to vector<8x256xi1>
    %63 = vector.broadcast %cst_25 : f32 to vector<8x256xf32>
    %64 = arith.select %62, %60, %63 : vector<8x256xi1>, vector<8x256xf32>
    %65 = tpu.concatenate %36, %37, %42, %47, %48, %53, %58, %59, %64 in 0 : vector<8x256xf32>, vector<8x256xf32>, vector<8x256xf32>, vector<8x256xf32>, vector<8x256xf32>, vector<8x256xf32>, vector<8x256xf32>, vector<8x256xf32>, vector<8x256xf32> -> vector<72x256xf32>
    %66 = arith.truncf %65 : vector<72x256xf32> to vector<72x256xbf16>
    %c0_26 = arith.constant 0 : index
    %c0_27 = arith.constant 0 : index
    %67 = vector.load %arg2[%c0_26, %c0_27] : memref<8x72xbf16, #tpu.memory_space<vmem>>, vector<8x72xbf16>
    %cst_28 = arith.constant dense<0.000000e+00> : vector<8x256xf32>
    %68 = tpu.matmul %67, %66, %cst_28 {dimension_numbers = #tpu.dot_dimension_numbers<[1], [0], [0], [1], [0, 0, 1, 1], [], []>} : vector<8x72xbf16>, vector<72x256xbf16>, vector<8x256xf32> -> vector<8x256xf32>
    %c0_29 = arith.constant 0 : index
    %c0_30 = arith.constant 0 : index
    %69 = vector.load %arg3[%c0_29, %c0_30] : memref<8x1xf32, #tpu.memory_space<vmem>>, vector<8x1xf32>
    %70 = vector.broadcast %69 : vector<8x1xf32> to vector<8x256xf32>
    %71 = arith.addf %68, %70 : vector<8x256xf32>
    %cst_31 = arith.constant 0.000000e+00 : f32
    %72 = vector.broadcast %cst_31 : f32 to vector<8x256xf32>
    %73 = arith.maximumf %71, %72 : vector<8x256xf32>
    %c0_32 = arith.constant 0 : index
    %c17_33 = arith.constant 17 : index
    %74 = vector.load %arg9[%c0_32, %c17_33] : memref<8x290xf32, #tpu.memory_space<vmem>>, vector<8x256xf32>
    tpu.vector_store %arg9[%c0_32, %c17_33], %73 {strides = array<i32>} : memref<8x290xf32, #tpu.memory_space<vmem>>, vector<8x256xf32>,
    %c0_34 = arith.constant 0 : index
    %c0_35 = arith.constant 0 : index
    %75 = vector.load %arg9[%c0_34, %c0_35] : memref<8x290xf32, #tpu.memory_space<vmem>>, vector<8x256xf32>
    %cst_36 = arith.constant 0.000000e+00 : f32
    %76 = vector.shape_cast %21 : vector<1x256xi1> to vector<1x256xi1>
    %77 = vector.broadcast %76 : vector<1x256xi1> to vector<8x256xi1>
    %78 = vector.broadcast %cst_36 : f32 to vector<8x256xf32>
    %79 = arith.select %77, %75, %78 : vector<8x256xi1>, vector<8x256xf32>
    %c0_37 = arith.constant 0 : index
    %c1_38 = arith.constant 1 : index
    %80 = vector.load %arg9[%c0_37, %c1_38] : memref<8x290xf32, #tpu.memory_space<vmem>>, vector<8x256xf32>
    %c0_39 = arith.constant 0 : index
    %c2_40 = arith.constant 2 : index
    %81 = vector.load %arg9[%c0_39, %c2_40] : memref<8x290xf32, #tpu.memory_space<vmem>>, vector<8x256xf32>
    %cst_41 = arith.constant 0.000000e+00 : f32
    %82 = vector.shape_cast %26 : vector<1x256xi1> to vector<1x256xi1>
    %83 = vector.broadcast %82 : vector<1x256xi1> to vector<8x256xi1>
    %84 = vector.broadcast %cst_41 : f32 to vector<8x256xf32>
    %85 = arith.select %83, %81, %84 : vector<8x256xi1>, vector<8x256xf32>
    %c0_42 = arith.constant 0 : index
    %c16_43 = arith.constant 16 : index
    %86 = vector.load %arg9[%c0_42, %c16_43] : memref<8x290xf32, #tpu.memory_space<vmem>>, vector<8x256xf32>
    %cst_44 = arith.constant 0.000000e+00 : f32
    %87 = vector.shape_cast %21 : vector<1x256xi1> to vector<1x256xi1>
    %88 = vector.broadcast %87 : vector<1x256xi1> to vector<8x256xi1>
    %89 = vector.broadcast %cst_44 : f32 to vector<8x256xf32>
    %90 = arith.select %88, %86, %89 : vector<8x256xi1>, vector<8x256xf32>
    %c0_45 = arith.constant 0 : index
    %c17_46 = arith.constant 17 : index
    %91 = vector.load %arg9[%c0_45, %c17_46] : memref<8x290xf32, #tpu.memory_space<vmem>>, vector<8x256xf32>
    %c0_47 = arith.constant 0 : index
    %c18_48 = arith.constant 18 : index
    %92 = vector.load %arg9[%c0_47, %c18_48] : memref<8x290xf32, #tpu.memory_space<vmem>>, vector<8x256xf32>
    %cst_49 = arith.constant 0.000000e+00 : f32
    %93 = vector.shape_cast %26 : vector<1x256xi1> to vector<1x256xi1>
    %94 = vector.broadcast %93 : vector<1x256xi1> to vector<8x256xi1>
    %95 = vector.broadcast %cst_49 : f32 to vector<8x256xf32>
    %96 = arith.select %94, %92, %95 : vector<8x256xi1>, vector<8x256xf32>
    %c0_50 = arith.constant 0 : index
    %c32_51 = arith.constant 32 : index
    %97 = vector.load %arg9[%c0_50, %c32_51] : memref<8x290xf32, #tpu.memory_space<vmem>>, vector<8x256xf32>
    %cst_52 = arith.constant 0.000000e+00 : f32
    %98 = vector.shape_cast %21 : vector<1x256xi1> to vector<1x256xi1>
    %99 = vector.broadcast %98 : vector<1x256xi1> to vector<8x256xi1>
    %100 = vector.broadcast %cst_52 : f32 to vector<8x256xf32>
    %101 = arith.select %99, %97, %100 : vector<8x256xi1>, vector<8x256xf32>
    %c0_53 = arith.constant 0 : index
    %c33_54 = arith.constant 33 : index
    %102 = vector.load %arg9[%c0_53, %c33_54] : memref<8x290xf32, #tpu.memory_space<vmem>>, vector<8x256xf32>
    %c0_55 = arith.constant 0 : index
    %c34_56 = arith.constant 34 : index
    %103 = vector.load %arg9[%c0_55, %c34_56] : memref<8x290xf32, #tpu.memory_space<vmem>>, vector<8x256xf32>
    %cst_57 = arith.constant 0.000000e+00 : f32
    %104 = vector.shape_cast %26 : vector<1x256xi1> to vector<1x256xi1>
    %105 = vector.broadcast %104 : vector<1x256xi1> to vector<8x256xi1>
    %106 = vector.broadcast %cst_57 : f32 to vector<8x256xf32>
    %107 = arith.select %105, %103, %106 : vector<8x256xi1>, vector<8x256xf32>
    %108 = tpu.concatenate %79, %80, %85, %90, %91, %96, %101, %102, %107 in 0 : vector<8x256xf32>, vector<8x256xf32>, vector<8x256xf32>, vector<8x256xf32>, vector<8x256xf32>, vector<8x256xf32>, vector<8x256xf32>, vector<8x256xf32>, vector<8x256xf32> -> vector<72x256xf32>
    %109 = arith.truncf %108 : vector<72x256xf32> to vector<72x256xbf16>
    %c0_58 = arith.constant 0 : index
    %c0_59 = arith.constant 0 : index
    %110 = vector.load %arg4[%c0_58, %c0_59] : memref<8x72xbf16, #tpu.memory_space<vmem>>, vector<8x72xbf16>
    %cst_60 = arith.constant dense<0.000000e+00> : vector<8x256xf32>
    %111 = tpu.matmul %110, %109, %cst_60 {dimension_numbers = #tpu.dot_dimension_numbers<[1], [0], [0], [1], [0, 0, 1, 1], [], []>} : vector<8x72xbf16>, vector<72x256xbf16>, vector<8x256xf32> -> vector<8x256xf32>
    %c0_61 = arith.constant 0 : index
    %c0_62 = arith.constant 0 : index
    %112 = vector.load %arg5[%c0_61, %c0_62] : memref<8x1xf32, #tpu.memory_space<vmem>>, vector<8x1xf32>
    %113 = vector.broadcast %112 : vector<8x1xf32> to vector<8x256xf32>
    %114 = arith.addf %111, %113 : vector<8x256xf32>
    %cst_63 = arith.constant 0.000000e+00 : f32
    %115 = vector.broadcast %cst_63 : f32 to vector<8x256xf32>
    %116 = arith.maximumf %114, %115 : vector<8x256xf32>
    %c0_64 = arith.constant 0 : index
    %c17_65 = arith.constant 17 : index
    %117 = vector.load %arg9[%c0_64, %c17_65] : memref<8x290xf32, #tpu.memory_space<vmem>>, vector<8x256xf32>
    tpu.vector_store %arg9[%c0_64, %c17_65], %116 {strides = array<i32>} : memref<8x290xf32, #tpu.memory_space<vmem>>, vector<8x256xf32>,
    %c0_66 = arith.constant 0 : index
    %c0_67 = arith.constant 0 : index
    %118 = vector.load %arg9[%c0_66, %c0_67] : memref<8x290xf32, #tpu.memory_space<vmem>>, vector<8x256xf32>
    %cst_68 = arith.constant 0.000000e+00 : f32
    %119 = vector.shape_cast %21 : vector<1x256xi1> to vector<1x256xi1>
    %120 = vector.broadcast %119 : vector<1x256xi1> to vector<8x256xi1>
    %121 = vector.broadcast %cst_68 : f32 to vector<8x256xf32>
    %122 = arith.select %120, %118, %121 : vector<8x256xi1>, vector<8x256xf32>
    %c0_69 = arith.constant 0 : index
    %c1_70 = arith.constant 1 : index
    %123 = vector.load %arg9[%c0_69, %c1_70] : memref<8x290xf32, #tpu.memory_space<vmem>>, vector<8x256xf32>
    %c0_71 = arith.constant 0 : index
    %c2_72 = arith.constant 2 : index
    %124 = vector.load %arg9[%c0_71, %c2_72] : memref<8x290xf32, #tpu.memory_space<vmem>>, vector<8x256xf32>
    %cst_73 = arith.constant 0.000000e+00 : f32
    %125 = vector.shape_cast %26 : vector<1x256xi1> to vector<1x256xi1>
    %126 = vector.broadcast %125 : vector<1x256xi1> to vector<8x256xi1>
    %127 = vector.broadcast %cst_73 : f32 to vector<8x256xf32>
    %128 = arith.select %126, %124, %127 : vector<8x256xi1>, vector<8x256xf32>
    %c0_74 = arith.constant 0 : index
    %c16_75 = arith.constant 16 : index
    %129 = vector.load %arg9[%c0_74, %c16_75] : memref<8x290xf32, #tpu.memory_space<vmem>>, vector<8x256xf32>
    %cst_76 = arith.constant 0.000000e+00 : f32
    %130 = vector.shape_cast %21 : vector<1x256xi1> to vector<1x256xi1>
    %131 = vector.broadcast %130 : vector<1x256xi1> to vector<8x256xi1>
    %132 = vector.broadcast %cst_76 : f32 to vector<8x256xf32>
    %133 = arith.select %131, %129, %132 : vector<8x256xi1>, vector<8x256xf32>
    %c0_77 = arith.constant 0 : index
    %c17_78 = arith.constant 17 : index
    %134 = vector.load %arg9[%c0_77, %c17_78] : memref<8x290xf32, #tpu.memory_space<vmem>>, vector<8x256xf32>
    %c0_79 = arith.constant 0 : index
    %c18_80 = arith.constant 18 : index
    %135 = vector.load %arg9[%c0_79, %c18_80] : memref<8x290xf32, #tpu.memory_space<vmem>>, vector<8x256xf32>
    %cst_81 = arith.constant 0.000000e+00 : f32
    %136 = vector.shape_cast %26 : vector<1x256xi1> to vector<1x256xi1>
    %137 = vector.broadcast %136 : vector<1x256xi1> to vector<8x256xi1>
    %138 = vector.broadcast %cst_81 : f32 to vector<8x256xf32>
    %139 = arith.select %137, %135, %138 : vector<8x256xi1>, vector<8x256xf32>
    %c0_82 = arith.constant 0 : index
    %c32_83 = arith.constant 32 : index
    %140 = vector.load %arg9[%c0_82, %c32_83] : memref<8x290xf32, #tpu.memory_space<vmem>>, vector<8x256xf32>
    %cst_84 = arith.constant 0.000000e+00 : f32
    %141 = vector.shape_cast %21 : vector<1x256xi1> to vector<1x256xi1>
    %142 = vector.broadcast %141 : vector<1x256xi1> to vector<8x256xi1>
    %143 = vector.broadcast %cst_84 : f32 to vector<8x256xf32>
    %144 = arith.select %142, %140, %143 : vector<8x256xi1>, vector<8x256xf32>
    %c0_85 = arith.constant 0 : index
    %c33_86 = arith.constant 33 : index
    %145 = vector.load %arg9[%c0_85, %c33_86] : memref<8x290xf32, #tpu.memory_space<vmem>>, vector<8x256xf32>
    %c0_87 = arith.constant 0 : index
    %c34_88 = arith.constant 34 : index
    %146 = vector.load %arg9[%c0_87, %c34_88] : memref<8x290xf32, #tpu.memory_space<vmem>>, vector<8x256xf32>
    %cst_89 = arith.constant 0.000000e+00 : f32
    %147 = vector.shape_cast %26 : vector<1x256xi1> to vector<1x256xi1>
    %148 = vector.broadcast %147 : vector<1x256xi1> to vector<8x256xi1>
    %149 = vector.broadcast %cst_89 : f32 to vector<8x256xf32>
    %150 = arith.select %148, %146, %149 : vector<8x256xi1>, vector<8x256xf32>
    %151 = tpu.concatenate %122, %123, %128, %133, %134, %139, %144, %145, %150 in 0 : vector<8x256xf32>, vector<8x256xf32>, vector<8x256xf32>, vector<8x256xf32>, vector<8x256xf32>, vector<8x256xf32>, vector<8x256xf32>, vector<8x256xf32>, vector<8x256xf32> -> vector<72x256xf32>
    %152 = arith.truncf %151 : vector<72x256xf32> to vector<72x256xbf16>
    %c0_90 = arith.constant 0 : index
    %c0_91 = arith.constant 0 : index
    %153 = vector.load %arg6[%c0_90, %c0_91] : memref<8x72xbf16, #tpu.memory_space<vmem>>, vector<8x72xbf16>
    %cst_92 = arith.constant dense<0.000000e+00> : vector<8x256xf32>
    %154 = tpu.matmul %153, %152, %cst_92 {dimension_numbers = #tpu.dot_dimension_numbers<[1], [0], [0], [1], [0, 0, 1, 1], [], []>} : vector<8x72xbf16>, vector<72x256xbf16>, vector<8x256xf32> -> vector<8x256xf32>
    %c0_93 = arith.constant 0 : index
    %c0_94 = arith.constant 0 : index
    %155 = vector.load %arg7[%c0_93, %c0_94] : memref<8x1xf32, #tpu.memory_space<vmem>>, vector<8x1xf32>
    %156 = vector.broadcast %155 : vector<8x1xf32> to vector<8x256xf32>
    %157 = arith.addf %154, %156 : vector<8x256xf32>
    %cst_95 = arith.constant 0.000000e+00 : f32
    %158 = vector.broadcast %cst_95 : f32 to vector<8x256xf32>
    %159 = arith.maximumf %157, %158 : vector<8x256xf32>
    %160 = tpu.concatenate %73, %116, %159 in 0 : vector<8x256xf32>, vector<8x256xf32>, vector<8x256xf32> -> vector<24x256xf32>
    %c0_96 = arith.constant 0 : index
    %c0_97 = arith.constant 0 : index
    %c0_98 = arith.constant 0 : index
    %161 = vector.load %arg8[%c0_96, %c0_97, %c0_98] : memref<1x24x256xf32, #tpu.memory_space<vmem>>, vector<1x24x256xf32>
    %162 = vector.shape_cast %161 : vector<1x24x256xf32> to vector<24x256xf32>
    %163 = vector.shape_cast %160 : vector<24x256xf32> to vector<1x24x256xf32>
    tpu.vector_store %arg8[%c0_96, %c0_97, %c0_98], %163 {strides = array<i32>} : memref<1x24x256xf32, #tpu.memory_space<vmem>>, vector<1x24x256xf32>,
    return
  }
  func.func @transform_0(%arg0: i32) -> (i32, i32, i32) {
    %c0_i32 = arith.constant 0 : i32
    %c0_i32_0 = arith.constant 0 : i32
    %c0_i32_1 = arith.constant 0 : i32
    return %arg0, %c0_i32, %c0_i32_0 : i32, i32, i32
  }
  func.func @transform_1(%arg0: i32) -> (i32, i32) {
    %c0_i32 = arith.constant 0 : i32
    %c0_i32_0 = arith.constant 0 : i32
    %c0_i32_1 = arith.constant 0 : i32
    return %c0_i32, %c0_i32_0 : i32, i32
  }
  func.func @transform_2(%arg0: i32) -> (i32, i32) {
    %c0_i32 = arith.constant 0 : i32
    %c0_i32_0 = arith.constant 0 : i32
    %c0_i32_1 = arith.constant 0 : i32
    return %c0_i32, %c0_i32_0 : i32, i32
  }
  func.func @transform_3(%arg0: i32) -> (i32, i32) {
    %c0_i32 = arith.constant 0 : i32
    %c0_i32_0 = arith.constant 0 : i32
    %c0_i32_1 = arith.constant 0 : i32
    return %c0_i32, %c0_i32_0 : i32, i32
  }
  func.func @transform_4(%arg0: i32) -> (i32, i32) {
    %c0_i32 = arith.constant 0 : i32
    %c0_i32_0 = arith.constant 0 : i32
    %c0_i32_1 = arith.constant 0 : i32
    return %c0_i32, %c0_i32_0 : i32, i32
  }
  func.func @transform_5(%arg0: i32) -> (i32, i32) {
    %c0_i32 = arith.constant 0 : i32
    %c0_i32_0 = arith.constant 0 : i32
    %c0_i32_1 = arith.constant 0 : i32
    return %c0_i32, %c0_i32_0 : i32, i32
  }
  func.func @transform_6(%arg0: i32) -> (i32, i32) {
    %c0_i32 = arith.constant 0 : i32
    %c0_i32_0 = arith.constant 0 : i32
    %c0_i32_1 = arith.constant 0 : i32
    return %c0_i32, %c0_i32_0 : i32, i32
  }
  func.func @transform_7(%arg0: i32) -> (i32, i32, i32) {
    %c0_i32 = arith.constant 0 : i32
    %c0_i32_0 = arith.constant 0 : i32
    %c0_i32_1 = arith.constant 0 : i32
    return %arg0, %c0_i32, %c0_i32_0 : i32, i32, i32
  }
}

</mosaic_0001>

<bundles_post_ra>
// kernel: conv_block_forward.1
= control target key start
LH: loop header
LB: loop body
LE: loop exit
PB: predicated region body
PF: predicated region fallthrough
CT: control target
= control target key end

     0   :  { %s1240_s24 = smov 0   ;;  %s1552_s0 = inlined_call_operand.vmem [shape: f32[2,4,256], index: 0, kind: input, shape index: {}]   ;;  %s1553_s1 = inlined_call_operand.vmem [shape: bf16[8,72], index: 1, kind: input, shape index: {}]   ;;  %s1554_s2 = inlined_call_operand.vmem [shape: f32[8,1], index: 2, kind: input, shape index: {}]   ;;  %s1555_s3 = inlined_call_operand.vmem [shape: bf16[8,72], index: 3, kind: input, shape index: {}]   ;;  %s1556_s4 = inlined_call_operand.vmem [shape: f32[8,1], index: 4, kind: input, shape index: {}]   ;;  %s1557_s5 = inlined_call_operand.vmem [shape: bf16[8,72], index: 5, kind: input, shape index: {}]   ;;  %s1558_s6 = inlined_call_operand.vmem [shape: f32[8,1], index: 6, kind: input, shape index: {}]   ;;  %s1559_s7 = inlined_call_operand.vmem [shape: f32[2,24,256], index: 7, kind: output, shape index: {}]  }
   0x1 LB: > { %s947_s25 = sadd.s32 4294967295, %s1186_s24   ;;  %p951_p0 = scmp.ge.s32.totalorder %s1186_s24, 1  ;;  %s1186_s24 = sphi %s1240_s24, %s17_s24  }
   0x2   : > { %p237_p1 = scmp.lt.s32.totalorder %s1186_s24, 3 }
   0x4   : > { %p238_p2 = pnand %p951_p0, %p237_p1 }
   0x5   : > { %p269_p3 = scmp.lt.s32.totalorder (!%p238_p2), %s947_s25, 1  ;;  %vm321_vm0 = vcmask (!%p238_p2), 277504   ;;  %v1188_v0 = vmov (!%p238_p2), 0.0   ;;  %s1189_s30 = smov (!%p238_p2), 17   ;;  %vm335_vm1 = vcmask (!%p238_p2), 1043592   ;;  %vm1564_vm2 = vcmask (!%p238_p2), 138240  }
   0x6   : > { %241 = sbr.rel (%p238_p2) target bundleno = 1498 (0x5da), region = 48  ;;  %319 = vst [vmem:[#allocation2] sm:$0xff] (!%p238_p2), %v1188_v0  ;;  %320 = vst [vmem:[#allocation2 + $0x8] sm:$0xff] (!%p238_p2), %v1188_v0  ;;  %vm338_vm3 = vcmask (!%p238_p2), 134144   ;;  %s1190_s8 = smov (!%p238_p2), 127   ;;  %v1198_v11 = vmov (!%p238_p2), 0   ;;  %v280_v15 = vlaneseq (!%p238_p2) }
   0x7   : > { %322 = vst.msk [vmem:[#allocation2 + $0x10] sm:$0xff] (!%p238_p2), %vm321_vm0, %v1188_v0  ;;  %s1191_s9 = smov (!%p238_p2), 126   ;;  %s1192_s10 = smov (!%p238_p2), 112   ;;  %514 = vmatprep.mubr.bf16.mxu0 (!%p238_p2), %v1198_v11  ;;  %1097 = vset.pattern.permute.xlu0 (!%p238_p2), %v1198_v11  ;;  %v465_v12 = vld [vmem:[%s1554_s2] sm:$0xff] (!%p238_p2)  ;;  %vm1566_vm5 = vcmask (!%p238_p2), 1039360   ;;  %vm1567_vm7 = vcmask (!%p238_p2), 1031168  }
   0x8   : > { %s1193_s11 = smov (!%p238_p2), 110   ;;  %s1194_s12 = smov (!%p238_p2), 111   ;;  %695 = vmatprep.mubr.bf16.mxu1 (!%p238_p2), %v1198_v11  ;;  %1178 = vset.pattern.permute.xlu1 (!%p238_p2), %v1198_v11  ;;  %v281_v18 = vand.u32 (!%p238_p2), 127, %v280_v15  ;;  %vm1199_vm8 = vmmov (!%p238_p2), 1   ;;  %vm1560_vm10 = vcmask (!%p238_p2), 916480   ;;  %vm1561_vm14 = vcmask (!%p238_p2), 900096  }
   0x9   : > { %s1195_s13 = smov (!%p238_p2), 96   ;;  %s1196_s14 = smov (!%p238_p2), 95   ;;  %vm438_vm0 = vcmask (!%p238_p2), 908288   ;;  %v827_v40 = vld [vmem:[%s1557_s5] sm:$0xf] (!%p238_p2) }
   0xa   : > { %s1197_s15 = smov (!%p238_p2), 94   ;;  %v282_v21 = vadd.s32 (!%p238_p2), 128, %v281_v18  ;;  %v287_v25 = vand.u32 (!%p238_p2), 15, %v281_v18 }
   0xc   : > { %v294_v24 = vand.u32 (!%p238_p2), 15, %v282_v21  ;;  %vm1302_vm6 = vcmp.ge.s32.totalorder (!%p238_p2), %v287_v25, 1  ;;  %vm1328_vm13 = vcmp.lt.s32.totalorder (!%p238_p2), %v287_v25, 15 }
   0xd   : > { %s1613_s25 = smov (!%p269_p3, %s947_s25), 1  ;;  %vm1319_vm11 = vmpackc.low %vm1199_vm8, %vm1302_vm6 }
   0xe   : > { %s1035_s26 = sshll.u32 %s1613_s25, 3  ;;  %vm1298_vm4 = vcmp.ge.s32.totalorder %v294_v24, 1  ;;  %vm1324_vm12 = vcmp.lt.s32.totalorder %v294_v24, 15  ;;  %s1036_s20 = smul.u32 48, %s1613_s25 }
   0xf   : > { %s273_s29 = scalar_lea.vmem %s1552_s0, %s1035_s26  ;;  %vm1310_vm9 = vmpackc.low %vm1199_vm8, %vm1298_vm4 }
  0x10   : > { %v323_v1 = vld [vmem:[%s273_s29] sm:$0xff]  ;;  %vm1344_vm15 = vmpackc.low %vm1298_vm4, %vm1324_vm12  ;;  %vm401_vm4 = vcmask 785408   ;;  %s1409_s23 = scalar_lea.vmem %s1559_s7, %s1036_s20 }
  0x11   : > { %326 = vrot.lane.b32.xlu0 %v323_v1, %s1189_s30  ;;  %v325_v2 = vcombine.high %v323_v1, %v323_v1 }
  0x15   : > { %328 = vrot.lane.b32.xlu0 %v325_v2, %s1189_s30 }
  0x83   : > { %v327_v3 = vpop.permute.xlu0 %326 }
  0x84   : > { %336 = vst.msk [vmem:[#allocation2] sm:$0xf] %vm335_vm1, %v327_v3  ;;  %vm1352_vm1 = vmpackc.low %vm1302_vm6, %vm1328_vm13 }
  0x85   : > { %vm1367_vm6 = vmpackc.low %vm1324_vm12, %vm1199_vm8 }
  0x87   : > { %v329_v4 = vpop.permute.xlu0 %328 }
  0x88   : > { %v331_v5 = vsel %vm1564_vm2, %v327_v3, %v329_v4  ;;  %339 = vst.msk [vmem:[#allocation2 + $0x10] sm:$0xf] %vm338_vm3, %v329_v4  ;;  %vm1562_vm3 = vcmask 769024  }
  0x89   : > { %337 = vst [vmem:[#allocation2 + $0x8] sm:$0xf] %v331_v5 }
  0x8b   : > { %v1257_v6 = vld [vmem:[#allocation2] sm:$0xff] }
  0x8c   : > { %421 = vrot.lane.b32.xlu1 %v1257_v6, %s1190_s8  ;;  %356 = vrot.lane.b32.xlu0 %v1257_v6, %s1191_s9 }
  0x8f   : > { %v348_v8 = vld [vmem:[#allocation2 + $0x10] sm:$0xff] }
  0x90   : > { %369 = vrot.lane.b32.xlu1 %v1257_v6, %s1192_s10  ;;  %382 = vrot.lane.b32.xlu0 %v1257_v6, %s1193_s11  ;;  %v1267_v7 = vld [vmem:[#allocation2 + $0x8] sm:$0xff] }
  0x91   : > { %v1062_v9 = vpack.i.bf16 %v348_v8, %v1267_v7  ;;  %v1092_v10 = vpack.i.bf16 %v1267_v7, %v1257_v6 }
  0x94   : > { %432 = vrot.lane.b32.xlu1 %v1257_v6, %s1194_s12  ;;  %395 = vrot.lane.b32.xlu0 %v1257_v6, %s1195_s13 }
  0x98   : > { %443 = vrot.lane.b32.xlu1 %v1257_v6, %s1196_s14  ;;  %1063 = vrot.lane.b32.xlu0 %v1062_v9, %s1191_s9 }
  0x9c   : > { %1073 = vrot.lane.b32.xlu0 %v1062_v9, %s1193_s11  ;;  %1058 = vrot.lane.b32.xlu1 %v1062_v9, %s1190_s8 }
  0xa0   : > { %1083 = vrot.lane.b32.xlu0 %v1062_v9, %s1195_s13  ;;  %1068 = vrot.lane.b32.xlu1 %v1062_v9, %s1192_s10 }
  0xa4   : > { %1093 = vrot.lane.b32.xlu0 %v1092_v10, %s1197_s15  ;;  %1078 = vrot.lane.b32.xlu1 %v1062_v9, %s1194_s12 }
  0xa8   : > { %1088 = vrot.lane.b32.xlu1 %v1062_v9, %s1196_s14  ;;  %468 = vperm.xlu0 %1097, %v465_v12  }
  0xac   : > { %412 = vrot.lane.b32.xlu1 %v348_v8, %s1197_s15 }
  0xfe   : > { %v422_v13 = vpop.permute.xlu1 %421  ;;  %v357_v14 = vpop.permute.xlu0 %356 }
 0x102   : > { %v370_v16 = vpop.permute.xlu1 %369  ;;  %v383_v17 = vpop.permute.xlu0 %382 }
 0x106   : > { %v433_v19 = vpop.permute.xlu1 %432  ;;  %v1294_v20 = vpop.permute.xlu0 %395 }
 0x10a   : > { %v1296_v22 = vpop.permute.xlu1 %443  ;;  %v1064_v23 = vpop.permute.xlu0 %1063 }
 0x10b   : > { %v1065_v32 = vunpack.i.l.bf16 %v1064_v23  ;;  %v1066_v33 = vunpack.i.h.bf16 %v1064_v23 }
 0x10d   : > { %v363_v46 = vsel %vm1567_vm7, %v357_v14, %v1065_v32  ;;  %v364_v48 = vsel %vm1567_vm7, %v1065_v32, %v1066_v33 }
 0x10e   : > { %v1059_v26 = vpop.permute.xlu1 %1058  ;;  %v1074_v27 = vpop.permute.xlu0 %1073 }
 0x10f   : > { %v1061_v29 = vunpack.i.h.bf16 %v1059_v26  ;;  %v1060_v30 = vunpack.i.l.bf16 %v1059_v26  ;;  %v1075_v47 = vunpack.i.l.bf16 %v1074_v27  ;;  %v1076_v49 = vunpack.i.h.bf16 %v1074_v27  ;;  %v464_v26 = vld [vmem:[%s1553_s1] sm:$0xf] }
 0x111   : > { %v429_v34 = vsel %vm1566_vm5, %v1060_v30, %v1061_v29  ;;  %v428_v36 = vsel %vm1566_vm5, %v422_v13, %v1060_v30  ;;  %v389_v62 = vsel %vm1561_vm14, %v383_v17, %v1075_v47  ;;  %v390_v0 = vsel %vm1561_vm14, %v1075_v47, %v1076_v49  ;;  %vm1374_vm14 = vmpackc.low %vm1328_vm13, %vm1199_vm8 }
 0x112   : > { %v1069_v37 = vpop.permute.xlu1 %1068  ;;  %v1084_v38 = vpop.permute.xlu0 %1083  ;;  %v956_v39 = vpack.c.bf16 %v429_v34, %v1267_v7  ;;  %v959_v41 = vpack.c.bf16 %v428_v36, %v1257_v6  ;;  %vm1568_vm8 = vcmask 1043456  }
 0x113   : > { %v1071_v43 = vunpack.i.h.bf16 %v1069_v37  ;;  %v1070_v44 = vunpack.i.l.bf16 %v1069_v37  ;;  %v1085_v63 = vunpack.i.l.bf16 %v1084_v38  ;;  %v1086_v1 = vunpack.i.h.bf16 %v1084_v38 }
 0x114   : > { %957 = vmatprep.subr.msk.bf16.mxu0 %vm1310_vm9, %v956_v39 }
 0x115   : > { %v376_v50 = vsel %vm1560_vm10, %v370_v16, %v1070_v44  ;;  %v377_v51 = vsel %vm1560_vm10, %v1070_v44, %v1071_v43  ;;  %960 = vmatpush1.bf16.msk.msra.mxu0 %vm1319_vm11, %v959_v41  ;;  %vm449_vm10 = vcmask 777216   ;;  %v402_v13 = vsel %vm401_vm4, %v1294_v20, %v1085_v63 }
 0x116   : > { %v962_v53 = vpack.c.bf16 %v377_v51, %v364_v48  ;;  %v965_v54 = vpack.c.bf16 %v376_v50, %v363_v46  ;;  %v1079_v55 = vpop.permute.xlu1 %1078  ;;  %v1094_v56 = vpop.permute.xlu0 %1093  ;;  %v403_v14 = vsel %vm401_vm4, %v1085_v63, %v1086_v1  ;;  %v648_v46 = vld [vmem:[%s1556_s4] sm:$0xff] }
 0x117   : > { %v1081_v58 = vunpack.i.h.bf16 %v1079_v55  ;;  %v1080_v59 = vunpack.i.l.bf16 %v1079_v55  ;;  %v1096_v60 = vunpack.i.h.bf16 %v1094_v56  ;;  %v1095_v61 = vunpack.i.l.bf16 %v1094_v56 }
 0x118   : > { %963 = vmatprep.subr.msk.bf16.mxu0 %vm1344_vm15, %v962_v53 }
 0x119   : > { %v439_v2 = vsel %vm438_vm0, %v433_v19, %v1080_v59  ;;  %v440_v3 = vsel %vm438_vm0, %v1080_v59, %v1081_v58  ;;  %966 = vmatpush1.bf16.msk.msra.mxu0 %vm1352_vm1, %v965_v54  ;;  %v415_v9 = vsel %vm1562_vm3, %v1095_v61, %v1096_v60 }
 0x11a   : > { %v968_v5 = vpack.c.bf16 %v390_v0, %v440_v3  ;;  %v971_v6 = vpack.c.bf16 %v389_v62, %v439_v2  ;;  %v1089_v7 = vpop.permute.xlu1 %1088  ;;  %v419_v17 = vsel %vm1328_vm13, %v415_v9, 0.0 }
 0x11b   : > { %v1091_v10 = vunpack.i.h.bf16 %v1089_v7  ;;  %v1090_v12 = vunpack.i.l.bf16 %v1089_v7 }
 0x11c   : > { %969 = vmatprep.subr.msk.bf16.mxu0 %vm1367_vm6, %v968_v5 }
 0x11d   : > { %v450_v15 = vsel %vm449_vm10, %v1296_v22, %v1090_v12  ;;  %v451_v16 = vsel %vm449_vm10, %v1090_v12, %v1091_v10  ;;  %972 = vmatpush1.bf16.msk.msra.mxu0 %vm1374_vm14, %v971_v6  ;;  %v462_v22 = vpack.c.bf16 %v419_v17, %v419_v17 }
 0x11e   : > { %v974_v18 = vpack.c.bf16 %v451_v16, %v403_v14  ;;  %v977_v19 = vpack.c.bf16 %v450_v15, %v402_v13  ;;  %v413_v20 = vpop.permute.xlu1 %412 }
 0x11f   : > { %v416_v21 = vsel %vm1562_vm3, %v1096_v60, %v413_v20  ;;  %v477_v25 = vsel %vm1568_vm8, %v462_v22, 0  ;;  %vm1563_vm3 = vcmask 588800  }
 0x120   : > { %v420_v23 = vsel %vm1324_vm12, %v416_v21, 0.0  ;;  %975 = vmatprep.subr.msk.bf16.mxu0 %vm1310_vm9, %v974_v18 }
 0x121   : > { %v463_v24 = vpack.c.bf16 %v420_v23, %v420_v23  ;;  %978 = vmatpush1.bf16.msk.msra.mxu0 %vm1319_vm11, %v977_v19 }
 0x123   : > { %979 = vmatprep.subr.msk.bf16.mxu0 %vm1568_vm8, %v463_v24 }
 0x125   : > { %491 = vmatpush1.bf16.msra.mxu0 %v477_v25 }
 0x127   : > { %v469_v27 = vpop.permute.xlu0 %468 }
 0x128   : > { %980 = vmatmul.mubr.msk.bf16.vlgmr.msra.gmra.mrb[0].mxu0 %vm1563_vm3, %v464_v26  ;;  %vm1565_vm3 = vcmask 1047688  }
 0x129   : > { %875 = vmatprep.mubr.bf16.mxu0 %v1198_v11 }
 0x1fb   : > { %v516_v28 = vpop.f32.mrb[0].mxu0 }
 0x1fc   : > { %v517_v29 = vadd.f32 %v516_v28, %v469_v27  ;;  %v518_v30 = vpop.f32.mrb[1].mxu0 }
 0x1fd   : > { %v519_v31 = vadd.f32 %v518_v30, %v469_v27  ;;  %v520_v32 = vpop.f32.mrb[2].mxu0 }
 0x1fe   : > { %v523_v33 = vmax.f32 %v517_v29, 0.0  ;;  %v521_v34 = vpop.f32.mrb[3].mxu0 }
 0x1ff   : > { %v524_v36 = vmax.f32 %v519_v31, 0.0 }
 0x200   : > { %886 = vst [vmem:[%s1409_s23] sm:$0xff] %v523_v33  ;;  %527 = vrot.lane.b32.xlu1 %v523_v33, %s1189_s30 }
 0x201   : > { %887 = vst [vmem:[%s1409_s23 + $0x8] sm:$0xff] %v524_v36 }
 0x204   : > { %529 = vrot.lane.b32.xlu1 %v524_v36, %s1189_s30 }
 0x272   : > { %v528_v11 = vpop.permute.xlu1 %527 }
 0x273   : > { %536 = vst.msk [vmem:[#allocation2] sm:$0xff] %vm1565_vm3, %v528_v11 }
 0x276   : > { %v530_v37 = vpop.permute.xlu1 %529 }
 0x277   : > { %538 = vst.msk [vmem:[#allocation2 + $0x10] sm:$0xff] %vm1564_vm2, %v530_v37  ;;  %v531_v41 = vsel %vm1564_vm2, %v528_v11, %v530_v37  ;;  %vm1589_vm2 = vcmask 916480  }
 0x278   : > { %vm1590_vm3 = vmmov %vm1589_vm2 }
 0x27a   : > { %v539_v38 = vld [vmem:[#allocation2] sm:$0xff] }
 0x27b   : > { %547 = vrot.lane.b32.xlu0 %v539_v38, %s1191_s9  ;;  %607 = vrot.lane.b32.xlu1 %v539_v38, %s1190_s8  ;;  %v1133_v44 = vpack.i.bf16 %v531_v41, %v539_v38 }
 0x27e   : > { %v543_v39 = vld [vmem:[#allocation2 + $0x10] sm:$0xff] }
 0x27f   : > { %571 = vrot.lane.b32.xlu0 %v539_v38, %s1193_s11  ;;  %559 = vrot.lane.b32.xlu1 %v539_v38, %s1192_s10  ;;  %v1098_v43 = vpack.i.bf16 %v543_v39, %v531_v41 }
 0x283   : > { %583 = vrot.lane.b32.xlu0 %v539_v38, %s1195_s13  ;;  %617 = vrot.lane.b32.xlu1 %v539_v38, %s1194_s12 }
 0x287   : > { %627 = vrot.lane.b32.xlu1 %v539_v38, %s1196_s14  ;;  %1099 = vrot.lane.b32.xlu0 %v1098_v43, %s1190_s8 }
 0x28b   : > { %1109 = vrot.lane.b32.xlu1 %v1098_v43, %s1192_s10  ;;  %1104 = vrot.lane.b32.xlu0 %v1098_v43, %s1191_s9 }
 0x28f   : > { %1119 = vrot.lane.b32.xlu1 %v1098_v43, %s1194_s12  ;;  %1114 = vrot.lane.b32.xlu0 %v1098_v43, %s1193_s11 }
 0x293   : > { %1129 = vrot.lane.b32.xlu1 %v1098_v43, %s1196_s14  ;;  %1124 = vrot.lane.b32.xlu0 %v1098_v43, %s1195_s13 }
 0x297   : > { %599 = vrot.lane.b32.xlu1 %v543_v39, %s1197_s15  ;;  %1134 = vrot.lane.b32.xlu0 %v1133_v44, %s1197_s15 }
 0x29b   : > { %651 = vperm.xlu0 %1097, %v648_v46  }
 0x2ed   : > { %v548_v47 = vpop.permute.xlu0 %547  ;;  %v608_v48 = vpop.permute.xlu1 %607 }
 0x2f1   : > { %v572_v49 = vpop.permute.xlu0 %571  ;;  %v560_v50 = vpop.permute.xlu1 %559 }
 0x2f5   : > { %v584_v51 = vpop.permute.xlu0 %583  ;;  %v618_v53 = vpop.permute.xlu1 %617 }
 0x2f9   : > { %v1100_v54 = vpop.permute.xlu0 %1099  ;;  %v628_v55 = vpop.permute.xlu1 %627 }
 0x2fa   : > { %v1102_v56 = vunpack.i.h.bf16 %v1100_v54  ;;  %v1101_v58 = vunpack.i.l.bf16 %v1100_v54 }
 0x2fc   : > { %v614_v59 = vsel %vm1566_vm5, %v1101_v58, %v1102_v56  ;;  %v613_v60 = vsel %vm1566_vm5, %v608_v48, %v1101_v58  ;;  %vm1591_vm5 = vcmask 900096  }
 0x2fd   : > { %v1105_v61 = vpop.permute.xlu0 %1104  ;;  %v1110_v62 = vpop.permute.xlu1 %1109  ;;  %v982_v63 = vpack.c.bf16 %v614_v59, %v531_v41  ;;  %v985_v0 = vpack.c.bf16 %v613_v60, %v539_v38 }
 0x2fe   : > { %v1107_v1 = vunpack.i.h.bf16 %v1105_v61  ;;  %v1106_v2 = vunpack.i.l.bf16 %v1105_v61  ;;  %v1112_v3 = vunpack.i.h.bf16 %v1110_v62  ;;  %v1111_v5 = vunpack.i.l.bf16 %v1110_v62 }
 0x2ff   : > { %983 = vmatprep.subr.msk.bf16.mxu1 %vm1310_vm9, %v982_v63 }
 0x300   : > { %v553_v6 = vsel %vm1567_vm7, %v548_v47, %v1106_v2  ;;  %v554_v7 = vsel %vm1567_vm7, %v1106_v2, %v1107_v1  ;;  %v565_v9 = vsel %vm1589_vm2, %v560_v50, %v1111_v5  ;;  %v566_v10 = vsel %vm1590_vm3, %v1111_v5, %v1112_v3  ;;  %986 = vmatpush1.bf16.msk.msra.mxu1 %vm1319_vm11, %v985_v0  ;;  %vm1592_vm7 = vmmov %vm1591_vm5 }
 0x301   : > { %v988_v12 = vpack.c.bf16 %v566_v10, %v554_v7  ;;  %v991_v13 = vpack.c.bf16 %v565_v9, %v553_v6  ;;  %v1115_v14 = vpop.permute.xlu0 %1114  ;;  %v1120_v15 = vpop.permute.xlu1 %1119  ;;  %vm1593_vm2 = vcmask 769024   ;;  %vm1596_vm3 = vcmask 1047688   ;;  %v828_v9 = vld [vmem:[%s1558_s6] sm:$0xff] }
 0x302   : > { %v1117_v16 = vunpack.i.h.bf16 %v1115_v14  ;;  %v1116_v17 = vunpack.i.l.bf16 %v1115_v14  ;;  %v1122_v18 = vunpack.i.h.bf16 %v1120_v15  ;;  %v1121_v19 = vunpack.i.l.bf16 %v1120_v15 }
 0x303   : > { %989 = vmatprep.subr.msk.bf16.mxu1 %vm1344_vm15, %v988_v12 }
 0x304   : > { %v577_v20 = vsel %vm1591_vm5, %v572_v49, %v1116_v17  ;;  %v578_v21 = vsel %vm1592_vm7, %v1116_v17, %v1117_v16  ;;  %v623_v23 = vsel %vm438_vm0, %v618_v53, %v1121_v19  ;;  %v624_v22 = vsel %vm438_vm0, %v1121_v19, %v1122_v18  ;;  %992 = vmatpush1.bf16.msk.msra.mxu1 %vm1352_vm1, %v991_v13  ;;  %vm1594_vm5 = vmmov %vm1593_vm2  ;;  %v647_v53 = vld [vmem:[%s1555_s3] sm:$0xf] }
 0x305   : > { %v994_v24 = vpack.c.bf16 %v578_v21, %v624_v22  ;;  %v997_v25 = vpack.c.bf16 %v577_v20, %v623_v23  ;;  %v1125_v26 = vpop.permute.xlu0 %1124  ;;  %v1130_v27 = vpop.permute.xlu1 %1129  ;;  %vm1595_vm7 = vcmask 588800  }
 0x306   : > { %v1127_v28 = vunpack.i.h.bf16 %v1125_v26  ;;  %v1126_v29 = vunpack.i.l.bf16 %v1125_v26  ;;  %v1132_v30 = vunpack.i.h.bf16 %v1130_v27  ;;  %v1131_v31 = vunpack.i.l.bf16 %v1130_v27 }
 0x307   : > { %995 = vmatprep.subr.msk.bf16.mxu1 %vm1367_vm6, %v994_v24 }
 0x308   : > { %v589_v32 = vsel %vm401_vm4, %v584_v51, %v1126_v29  ;;  %v590_v33 = vsel %vm401_vm4, %v1126_v29, %v1127_v28  ;;  %v633_v34 = vsel %vm449_vm10, %v628_v55, %v1131_v31  ;;  %v634_v36 = vsel %vm449_vm10, %v1131_v31, %v1132_v30  ;;  %998 = vmatpush1.bf16.msk.msra.mxu1 %vm1374_vm14, %v997_v25 }
 0x309   : > { %v1000_v11 = vpack.c.bf16 %v634_v36, %v590_v33  ;;  %v1003_v37 = vpack.c.bf16 %v633_v34, %v589_v32  ;;  %v1135_v38 = vpop.permute.xlu0 %1134  ;;  %v600_v43 = vpop.permute.xlu1 %599 }
 0x30a   : > { %v1137_v39 = vunpack.i.h.bf16 %v1135_v38  ;;  %v1136_v41 = vunpack.i.l.bf16 %v1135_v38 }
 0x30b   : > { %1001 = vmatprep.subr.msk.bf16.mxu1 %vm1310_vm9, %v1000_v11 }
 0x30c   : > { %v602_v44 = vsel %vm1593_vm2, %v1137_v39, %v600_v43  ;;  %1004 = vmatpush1.bf16.msk.msra.mxu1 %vm1319_vm11, %v1003_v37  ;;  %v601_v46 = vsel %vm1594_vm5, %v1136_v41, %v1137_v39  ;;  %vm1597_vm2 = vcmask 138240  }
 0x30d   : > { %v606_v47 = vsel %vm1324_vm12, %v602_v44, 0.0  ;;  %v605_v48 = vsel %vm1328_vm13, %v601_v46, 0.0  ;;  %vm1598_vm5 = vmmov %vm1597_vm2 }
 0x30e   : > { %v646_v49 = vpack.c.bf16 %v606_v47, %v606_v47  ;;  %v645_v50 = vpack.c.bf16 %v605_v48, %v605_v48 }
 0x310   : > { %1005 = vmatprep.subr.msk.bf16.mxu1 %vm1568_vm8, %v646_v49  ;;  %v658_v51 = vsel %vm1568_vm8, %v645_v50, 0  ;;  %vm1603_vm8 = vcmask 1031168  }
 0x311   : > { %672 = vmatpush1.bf16.msra.mxu1 %v658_v51 }
 0x314   : > { %1006 = vmatmul.mubr.msk.bf16.vlgmr.msra.gmra.mrb[0].mxu1 %vm1595_vm7, %v647_v53  ;;  %vm1599_vm7 = vcmask 1039360  }
 0x31a   : > { %v652_v54 = vpop.permute.xlu0 %651 }
 0x3e7   : > { %v697_v55 = vpop.f32.mrb[0].mxu1 }
 0x3e8   : > { %v698_v56 = vadd.f32 %v697_v55, %v652_v54  ;;  %v699_v58 = vpop.f32.mrb[1].mxu1 }
 0x3e9   : > { %v700_v59 = vadd.f32 %v699_v58, %v652_v54  ;;  %v701_v60 = vpop.f32.mrb[2].mxu1 }
 0x3ea   : > { %v704_v61 = vmax.f32 %v698_v56, 0.0  ;;  %v702_v62 = vpop.f32.mrb[3].mxu1 }
 0x3eb   : > { %v705_v63 = vmax.f32 %v700_v59, 0.0 }
 0x3ec   : > { %888 = vst [vmem:[%s1409_s23 + $0x10] sm:$0xff] %v704_v61  ;;  %708 = vrot.lane.b32.xlu1 %v704_v61, %s1189_s30 }
 0x3ed   : > { %889 = vst [vmem:[%s1409_s23 + $0x18] sm:$0xff] %v705_v63  ;;  %710 = vrot.lane.b32.xlu0 %v705_v63, %s1189_s30 }
 0x45e   : > { %v709_v0 = vpop.permute.xlu1 %708 }
 0x45f   : > { %716 = vst.msk [vmem:[#allocation2] sm:$0xff] %vm1596_vm3, %v709_v0  ;;  %v711_v1 = vpop.permute.xlu0 %710  ;;  %vm1600_vm3 = vmmov %vm1599_vm7 }
 0x460   : > { %v712_v2 = vsel %vm1597_vm2, %v709_v0, %v711_v1  ;;  %718 = vst.msk [vmem:[#allocation2 + $0x10] sm:$0xff] %vm1598_vm5, %v711_v1  ;;  %vm1601_vm2 = vcmask 916480  }
 0x461   : > { %717 = vst [vmem:[#allocation2 + $0x8] sm:$0xff] %v712_v2  ;;  %vm1602_vm5 = vmmov %vm1601_vm2 }
 0x466   : > { %v719_v3 = vld [vmem:[#allocation2] sm:$0xff] }
 0x467   : > { %727 = vrot.lane.b32.xlu1 %v719_v3, %s1191_s9  ;;  %787 = vrot.lane.b32.xlu0 %v719_v3, %s1190_s8  ;;  %v723_v5 = vld [vmem:[#allocation2 + $0x10] sm:$0xff]  ;;  %v1173_v7 = vpack.i.bf16 %v712_v2, %v719_v3 }
 0x468   : > { %v1138_v6 = vpack.i.bf16 %v723_v5, %v712_v2 }
 0x46b   : > { %751 = vrot.lane.b32.xlu1 %v719_v3, %s1193_s11  ;;  %739 = vrot.lane.b32.xlu0 %v719_v3, %s1192_s10 }
 0x46f   : > { %763 = vrot.lane.b32.xlu1 %v719_v3, %s1195_s13  ;;  %797 = vrot.lane.b32.xlu0 %v719_v3, %s1194_s12 }
 0x473   : > { %807 = vrot.lane.b32.xlu0 %v719_v3, %s1196_s14  ;;  %1139 = vrot.lane.b32.xlu1 %v1138_v6, %s1190_s8 }
 0x477   : > { %1149 = vrot.lane.b32.xlu0 %v1138_v6, %s1192_s10  ;;  %1144 = vrot.lane.b32.xlu1 %v1138_v6, %s1191_s9 }
 0x47b   : > { %1159 = vrot.lane.b32.xlu0 %v1138_v6, %s1194_s12  ;;  %1154 = vrot.lane.b32.xlu1 %v1138_v6, %s1193_s11 }
 0x47f   : > { %1169 = vrot.lane.b32.xlu0 %v1138_v6, %s1196_s14  ;;  %1164 = vrot.lane.b32.xlu1 %v1138_v6, %s1195_s13 }
 0x483   : > { %779 = vrot.lane.b32.xlu0 %v723_v5, %s1197_s15  ;;  %1174 = vrot.lane.b32.xlu1 %v1173_v7, %s1197_s15 }
 0x487   : > { %831 = vperm.xlu1 %1178, %v828_v9  }
 0x4d9   : > { %v728_v10 = vpop.permute.xlu1 %727  ;;  %v788_v12 = vpop.permute.xlu0 %787 }
 0x4dd   : > { %v752_v13 = vpop.permute.xlu1 %751  ;;  %v740_v14 = vpop.permute.xlu0 %739 }
 0x4e1   : > { %v764_v15 = vpop.permute.xlu1 %763  ;;  %v798_v16 = vpop.permute.xlu0 %797 }
 0x4e5   : > { %v808_v17 = vpop.permute.xlu0 %807  ;;  %v1140_v18 = vpop.permute.xlu1 %1139 }
 0x4e6   : > { %v1142_v19 = vunpack.i.h.bf16 %v1140_v18  ;;  %v1141_v20 = vunpack.i.l.bf16 %v1140_v18 }
 0x4e8   : > { %v793_v21 = vsel %vm1599_vm7, %v788_v12, %v1141_v20  ;;  %v794_v23 = vsel %vm1600_vm3, %v1141_v20, %v1142_v19  ;;  %vm1604_vm7 = vmmov %vm1603_vm8 }
 0x4e9   : > { %v1008_v22 = vpack.c.bf16 %v794_v23, %v712_v2  ;;  %v1011_v24 = vpack.c.bf16 %v793_v21, %v719_v3  ;;  %v1150_v25 = vpop.permute.xlu0 %1149  ;;  %v1145_v26 = vpop.permute.xlu1 %1144 }
 0x4ea   : > { %v1152_v27 = vunpack.i.h.bf16 %v1150_v25  ;;  %v1151_v28 = vunpack.i.l.bf16 %v1150_v25  ;;  %v1147_v29 = vunpack.i.h.bf16 %v1145_v26  ;;  %v1146_v30 = vunpack.i.l.bf16 %v1145_v26 }
 0x4eb   : > { %1009 = vmatprep.subr.msk.bf16.mxu0 %vm1310_vm9, %v1008_v22 }
 0x4ec   : > { %v745_v31 = vsel %vm1601_vm2, %v740_v14, %v1151_v28  ;;  %v746_v32 = vsel %vm1602_vm5, %v1151_v28, %v1152_v27  ;;  %v733_v33 = vsel %vm1603_vm8, %v728_v10, %v1146_v30  ;;  %v734_v34 = vsel %vm1604_vm7, %v1146_v30, %v1147_v29  ;;  %1012 = vmatpush1.bf16.msk.msra.mxu0 %vm1319_vm11, %v1011_v24 }
 0x4ed   : > { %v1014_v36 = vpack.c.bf16 %v746_v32, %v734_v34  ;;  %v1017_v11 = vpack.c.bf16 %v745_v31, %v733_v33  ;;  %v1160_v37 = vpop.permute.xlu0 %1159  ;;  %v1155_v38 = vpop.permute.xlu1 %1154  ;;  %vm1605_vm8 = vcmask 900096  }
 0x4ee   : > { %v1162_v39 = vunpack.i.h.bf16 %v1160_v37  ;;  %v1161_v41 = vunpack.i.l.bf16 %v1160_v37  ;;  %v1157_v43 = vunpack.i.h.bf16 %v1155_v38  ;;  %v1156_v44 = vunpack.i.l.bf16 %v1155_v38  ;;  %vm1606_vm3 = vmmov %vm1605_vm8 }
 0x4ef   : > { %1015 = vmatprep.subr.msk.bf16.mxu0 %vm1344_vm15, %v1014_v36  ;;  %vm1607_vm15 = vcmask 769024  }
 0x4f0   : > { %v803_v46 = vsel %vm438_vm0, %v798_v16, %v1161_v41  ;;  %v804_v47 = vsel %vm438_vm0, %v1161_v41, %v1162_v39  ;;  %v757_v48 = vsel %vm1605_vm8, %v752_v13, %v1156_v44  ;;  %v758_v49 = vsel %vm1606_vm3, %v1156_v44, %v1157_v43  ;;  %1018 = vmatpush1.bf16.msk.msra.mxu0 %vm1352_vm1, %v1017_v11  ;;  %vm1608_vm0 = vmmov %vm1607_vm15 }
 0x4f1   : > { %v1020_v50 = vpack.c.bf16 %v758_v49, %v804_v47  ;;  %v1023_v51 = vpack.c.bf16 %v757_v48, %v803_v46  ;;  %v1170_v53 = vpop.permute.xlu0 %1169  ;;  %v1165_v54 = vpop.permute.xlu1 %1164 }
 0x4f2   : > { %v1172_v55 = vunpack.i.h.bf16 %v1170_v53  ;;  %v1171_v56 = vunpack.i.l.bf16 %v1170_v53  ;;  %v1167_v58 = vunpack.i.h.bf16 %v1165_v54  ;;  %v1166_v52 = vunpack.i.l.bf16 %v1165_v54 }
 0x4f3   : > { %1021 = vmatprep.subr.msk.bf16.mxu0 %vm1367_vm6, %v1020_v50 }
 0x4f4   : > { %v813_v59 = vsel %vm449_vm10, %v808_v17, %v1171_v56  ;;  %v814_v60 = vsel %vm449_vm10, %v1171_v56, %v1172_v55  ;;  %v769_v61 = vsel %vm401_vm4, %v764_v15, %v1166_v52  ;;  %v770_v57 = vsel %vm401_vm4, %v1166_v52, %v1167_v58  ;;  %1024 = vmatpush1.bf16.msk.msra.mxu0 %vm1374_vm14, %v1023_v51 }
 0x4f5   : > { %v1026_v62 = vpack.c.bf16 %v814_v60, %v770_v57  ;;  %v1029_v63 = vpack.c.bf16 %v813_v59, %v769_v61  ;;  %v1175_v0 = vpop.permute.xlu1 %1174  ;;  %v780_v3 = vpop.permute.xlu0 %779  ;;  %vm1609_vm10 = vcmask 1043456  }
 0x4f6   : > { %v1177_v1 = vunpack.i.h.bf16 %v1175_v0  ;;  %v1176_v2 = vunpack.i.l.bf16 %v1175_v0 }
 0x4f7   : > { %1027 = vmatprep.subr.msk.bf16.mxu0 %vm1310_vm9, %v1026_v62  ;;  %vm1610_vm9 = vmmov %vm1609_vm10 }
 0x4f8   : > { %v782_v4 = vsel %vm1607_vm15, %v1177_v1, %v780_v3  ;;  %v781_v5 = vsel %vm1608_vm0, %v1176_v2, %v1177_v1  ;;  %1030 = vmatpush1.bf16.msk.msra.mxu0 %vm1319_vm11, %v1029_v63  ;;  %vm1611_vm11 = vcmask 588800  }
 0x4f9   : > { %v786_v8 = vsel %vm1324_vm12, %v782_v4, 0.0  ;;  %v785_v6 = vsel %vm1328_vm13, %v781_v5, 0.0 }
 0x4fa   : > { %v826_v7 = vpack.c.bf16 %v786_v8, %v786_v8  ;;  %v825_v9 = vpack.c.bf16 %v785_v6, %v785_v6 }
 0x4fc   : > { %1031 = vmatprep.subr.msk.bf16.mxu0 %vm1609_vm10, %v826_v7  ;;  %v838_v35 = vsel %vm1610_vm9, %v825_v9, 0 }
 0x4fd   : > { %852 = vmatpush1.bf16.msra.mxu0 %v838_v35 }
 0x500   : > { %1032 = vmatmul.mubr.msk.bf16.vlgmr.msra.gmra.mrb[4].mxu0 %vm1611_vm11, %v827_v40 }
 0x506   : > { %v832_v42 = vpop.permute.xlu1 %831 }
 0x5d3   : > { %v877_v10 = vpop.f32.mrb[4].mxu0 }
 0x5d4   : > { %v878_v12 = vadd.f32 %v877_v10, %v832_v42  ;;  %v879_v45 = vpop.f32.mrb[5].mxu0 }
 0x5d5   : > { %v880_v13 = vadd.f32 %v879_v45, %v832_v42  ;;  %v881_v14 = vpop.f32.mrb[6].mxu0 }
 0x5d6   : > { %v884_v15 = vmax.f32 %v878_v12, 0.0  ;;  %v882_v16 = vpop.f32.mrb[7].mxu0 }
 0x5d7   : > { %v885_v17 = vmax.f32 %v880_v13, 0.0 }
 0x5d8   : > { %890 = vst [vmem:[%s1409_s23 + $0x20] sm:$0xff] %v884_v15 }
 0x5d9   : > { %891 = vst [vmem:[%s1409_s23 + $0x28] sm:$0xff] %v885_v17 }
 0x5da PF: > { %s17_s24 = sadd.s32 1, %s1186_s24  }
 0x5db   : > { %p14_p4 = scmp.ge.s32.totalorder %s17_s24, 4  }
 0x5dd   :  { %16 = sbr.rel (!%p14_p4) target bundleno = 1 (0x1), region = 78 }

</bundles_post_ra>
